<compile_context>
chip_gen: v5e
topology: v5e:2x2
jax: 0.10.0
libtpu: 0.0.40
codegen_flags: <defaults>
</compile_context>

<pallas_src>
import numpy as np
import jax
import jax.numpy as jnp
from jax.experimental import pallas as pl
from jax.experimental.pallas import tpu as pltpu

LANE = 128
ROW_ALIGN = 16        # row/sublane alignment (bf16-friendly)
MAX_ROW_TILE = 512    # amortizes the ~0.35 us per-grid-step overhead
MAX_K_FULL = 4096     # single reduction step when m_pad <= this
K_TILE = 2048         # otherwise tile the reduction axis at this size


def _round_up(v, m):
    return ((v + m - 1) // m) * m


def _vmem_limit_bytes():
    """Generation-aware VMEM budget: ~56 MiB on v7x (64 MiB), <=100 MiB on v5e/v6e."""
    try:
        cap = int(pltpu.get_tpu_info().vmem_capacity_bytes)
    except Exception:
        cap = 128 * 1024 * 1024
    return int(max(min(cap * 7 // 8, 100 * 1024 * 1024), 32 * 1024 * 1024))


# ----------------------------------------------------------------------------
# Host-side (glue) index bookkeeping — exact ports of the PyTorch integer code.
# TODO(synk): nonzero/unique/cumsum have data-dependent output sizes; no clean Pallas port.
# ----------------------------------------------------------------------------
def get_node_reduction_batch_np(num_nodes, batch, pool_factor):
    idxs = np.arange(num_nodes, dtype=np.int64)
    pooled_idxs = idxs // pool_factor + batch
    diff = batch[1:] - batch[:-1]
    caps = np.nonzero(diff)[0] + 1
    floor_fix = np.zeros(num_nodes, dtype=np.int64)
    floor_fix[caps] = pooled_idxs[caps] - pooled_idxs[caps - 1] - 1
    floor_fix = np.cumsum(floor_fix)
    return pooled_idxs - floor_fix


def pool_edge_data_np(edge_index, edge_batch, pool_factor):
    pooled_edges = np.vstack((edge_index // pool_factor + edge_batch, edge_batch))
    unique_pooled_edges = np.unique(pooled_edges, axis=1)  # lexicographically sorted
    first_edge_index = unique_pooled_edges[0]
    new_edge_batch = unique_pooled_edges[2]
    diff = new_edge_batch[1:] - new_edge_batch[:-1]
    caps = np.nonzero(diff)[0] + 1
    floor_fix = np.zeros(first_edge_index.shape[0], dtype=np.int64)
    floor_fix[caps] = first_edge_index[caps] - first_edge_index[caps - 1] - 1
    floor_fix = np.cumsum(floor_fix)
    new_edge_index = np.vstack((first_edge_index, unique_pooled_edges[1])) - floor_fix
    return new_edge_index, new_edge_batch


def get_new_node_batch_np(node_reduction_batch, batch_lengths):
    batch_diff = np.concatenate(
        ([1], node_reduction_batch[1:] - node_reduction_batch[:-1])
    )
    cumsum_batch_diff = np.cumsum(batch_diff)
    used_cumsum_lengths = np.cumsum(batch_lengths) - 1
    new_lengths = cumsum_batch_diff[used_cumsum_lengths]
    new_lengths = np.concatenate(([new_lengths[0]], new_lengths[1:] - new_lengths[:-1]))
    new_batch = np.repeat(np.arange(new_lengths.shape[0], dtype=np.int64), new_lengths)
    return new_batch, new_lengths


# ----------------------------------------------------------------------------
# Tiling / banding helpers
# ----------------------------------------------------------------------------
def _choose_tiles(m):
    if m <= MAX_ROW_TILE:
        m_pad = _round_up(m, ROW_ALIGN)
        tm = m_pad
        tk = m_pad
        return m_pad, tm, tk
    tm = MAX_ROW_TILE
    m_pad = _round_up(m, tm)
    if m_pad <= MAX_K_FULL:
        tk = m_pad                       # single reduction step
    else:
        tk = K_TILE
        m_pad = _round_up(m, K_TILE)     # tm=512 divides 2048
    return m_pad, tm, tk


def _build_bands(seg, n, m_pad, tm):
    """Banded node windows: band i holds the (contiguous) nodes whose segment id lies
    in [i*tm, (i+1)*tm).  seg is nondecreasing, so spans are contiguous & disjoint."""
    num_tiles = m_pad // tm
    tiles = np.arange(num_tiles)
    starts = np.searchsorted(seg, tiles * tm, side="left")
    stops = np.searchsorted(seg, (tiles + 1) * tm, side="left")
    spans = stops - starts
    wn = _round_up(max(int(spans.max()), 1), ROW_ALIGN)
    offs = np.arange(wn)[None, :]
    idx = starts[:, None] + offs                              # (num_tiles, wn)
    valid = offs < spans[:, None]
    idx_c = np.minimum(idx, n - 1)
    gather_idx = np.where(valid, idx_c, n - 1).astype(np.int32)
    seg_band = np.where(valid, seg[idx_c], -1).astype(np.int32)
    return gather_idx, seg_band.reshape(num_tiles, 1, wn), wn


# ----------------------------------------------------------------------------
# Pallas kernel 1: band-limited selector matmul pooling (bf16 MXU path), fused
# with the GCNConv feature transform:  h = (pooled @ W) * D^{-1/2}(source).
# grid = (m_pad // tm,)   — row parallel, lane-dense whole-tile stores.
# ----------------------------------------------------------------------------
def _pool_transform_kernel(seg_ref, scale_ref, dinv_ref, xb_ref, w_ref,
                           pooled_ref, h_ref):
    tm = pooled_ref.shape[0]
    wn = xb_ref.shape[0]
    row0 = pl.program_id(0) * tm
    seg = seg_ref[0]                                            # (1, wn) int32
    row_ids = jax.lax.broadcasted_iota(jnp.int32, (tm, wn), 0) + row0
    # Exact 0/1 selector in the compute dtype (bf16 fast MXU path).  The mean 1/cnt
    # scale is applied post-matmul in f32 (1/cnt is generally not bf16-representable).
    sel = (row_ids == seg).astype(xb_ref.dtype)
    pooled = jnp.dot(sel, xb_ref[...], preferred_element_type=jnp.float32)
    pooled = pooled * scale_ref[...]                            # f32 row scale
    pooled_ref[...] = pooled
    h = jnp.dot(pooled, w_ref[...], preferred_element_type=jnp.float32)
    h_ref[...] = (h * dinv_ref[...]).astype(h_ref.dtype)


def pool_transform_pallas(seg_band, sel_scale, dinv, x_band, w_pad, tm,
                          h_dtype, vmem_limit):
    num_tiles, _, wn = seg_band.shape
    m_pad = sel_scale.shape[0]
    c_in_pad = x_band.shape[1]
    c_out_pad = w_pad.shape[1]
    return pl.pallas_call(
        _pool_transform_kernel,
        out_shape=(jax.ShapeDtypeStruct((m_pad, c_in_pad), jnp.float32),
                   jax.ShapeDtypeStruct((m_pad, c_out_pad), h_dtype)),
        grid=(num_tiles,),
        in_specs=[
            pl.BlockSpec((1, 1, wn), lambda i: (i, 0, 0)),        # band segment ids
            pl.BlockSpec((tm, 1), lambda i: (i, 0)),              # 1/cnt (mean) or 1 (add)
            pl.BlockSpec((tm, 1), lambda i: (i, 0)),              # source D^{-1/2}
            pl.BlockSpec((wn, c_in_pad), lambda i: (i, 0)),       # banded x window
            pl.BlockSpec((c_in_pad, c_out_pad), lambda i: (0, 0)),  # W (resident)
        ],
        out_specs=(
            pl.BlockSpec((tm, c_in_pad), lambda i: (i, 0)),       # pooled (new_x)
            pl.BlockSpec((tm, c_out_pad), lambda i: (i, 0)),      # h = (pooled@W)*dinv
        ),
        compiler_params=pltpu.CompilerParams(
            dimension_semantics=("parallel",),
            vmem_limit_bytes=vmem_limit),
    )(seg_band, sel_scale, dinv, x_band, w_pad)


# ----------------------------------------------------------------------------
# Pallas kernel 2: tiled GCN propagation  out = ReLU( (A @ h) * D^{-1/2} + bias ).
# grid = (m_pad//tm, m_pad//tk); bf16 A/h, f32 accumulation directly into o_ref,
# pl.when init/finalize, reduction axis last / "arbitrary".
# ----------------------------------------------------------------------------
def _gcn_propagate_kernel(a_ref, h_ref, dinv_ref, b_ref, o_ref):
    k = pl.program_id(1)
    tk = a_ref.shape[1]
    if h_ref.shape[0] == tk:          # h streamed per K step (or single K step)
        h_blk = h_ref[...]
    else:                             # h fully resident: slice the current K window
        h_blk = h_ref[pl.ds(pl.multiple_of(k * tk, tk), tk), :]
    prod = jnp.dot(a_ref[...], h_blk, preferred_element_type=jnp.float32)

    @pl.when(k == 0)
    def _():
        o_ref[...] = prod

    @pl.when(k > 0)
    def _():
        o_ref[...] += prod

    @pl.when(k == pl.num_programs(1) - 1)
    def _():
        o_ref[...] = jnp.maximum(o_ref[...] * dinv_ref[...] + b_ref[...], 0.0)  # ReLU


def gcn_propagate_pallas(a_pad, h_pad, dinv, b_pad, tm, tk, vmem_limit):
    m_pad = a_pad.shape[0]
    c_out_pad = h_pad.shape[1]
    h_bytes = int(h_pad.size) * h_pad.dtype.itemsize
    h_resident = (tk < m_pad) and (2 * h_bytes <= vmem_limit // 4)
    if h_resident:
        h_spec = pl.BlockSpec((m_pad, c_out_pad), lambda i, k: (0, 0))   # resident
    else:
        h_spec = pl.BlockSpec((tk, c_out_pad), lambda i, k: (k, 0))      # streamed
    return pl.pallas_call(
        _gcn_propagate_kernel,
        out_shape=jax.ShapeDtypeStruct((m_pad, c_out_pad), jnp.float32),
        grid=(m_pad // tm, m_pad // tk),
        in_specs=[
            pl.BlockSpec((tm, tk), lambda i, k: (i, k)),          # A tile (0/1)
            h_spec,                                               # h
            pl.BlockSpec((tm, 1), lambda i, k: (i, 0)),           # dest D^{-1/2}
            pl.BlockSpec((1, c_out_pad), lambda i, k: (0, 0)),    # bias
        ],
        out_specs=pl.BlockSpec((tm, c_out_pad), lambda i, k: (i, 0)),
        compiler_params=pltpu.CompilerParams(
            dimension_semantics=("parallel", "arbitrary"),
            vmem_limit_bytes=vmem_limit),
    )(a_pad, h_pad, dinv, b_pad)


# ----------------------------------------------------------------------------
# PoolBlock forward (wrapper)
# ----------------------------------------------------------------------------
def pool_block_forward(x, edge_index, batch, batch_lengths, edge_batch,
                       w, b, pool_factor=2, pool_type="mean", low_precision=True):
    x = jnp.asarray(x, jnp.float32)
    n, c_in = x.shape
    w = jnp.asarray(w, jnp.float32)
    b = jnp.asarray(b, jnp.float32)
    c_out = w.shape[1]

    # ---- host-side graph index bookkeeping (glue) ----
    node_reduction_batch = get_node_reduction_batch_np(n, batch, pool_factor)
    m = int(node_reduction_batch[-1] + 1)

    new_edge_index, new_edge_batch = pool_edge_data_np(edge_index, edge_batch, pool_factor)
    sparse_size = int(new_edge_index[0][-1] + 1)
    assert sparse_size == m, "inconsistent pooled graph sizes"

    new_batch, new_batch_lengths = get_new_node_batch_np(node_reduction_batch, batch_lengths)

    if pool_type not in ("mean", "add"):
        # TODO(synk): "max" graph pooling has no matmul formulation; not ported to Pallas.
        raise NotImplementedError("pool_type 'max' not supported by the Pallas path")

    # ---- tiling / padding ----
    m_pad, tm, tk = _choose_tiles(m)
    c_in_pad = _round_up(c_in, LANE)
    c_out_pad = _round_up(c_out, LANE)
    compute_dtype = jnp.bfloat16 if low_precision else jnp.float32
    vmem_limit = _vmem_limit_bytes()

    # ---- banded x / segment-id windows (band-limited selector) ----
    gather_idx, seg_band_np, wn = _build_bands(node_reduction_batch, n, m_pad, tm)
    num_tiles = m_pad // tm
    x_c = x.astype(compute_dtype)
    x_band = jnp.take(x_c, jnp.asarray(gather_idx.reshape(-1)), axis=0)     # device gather
    x_band = jnp.zeros((num_tiles * wn, c_in_pad), compute_dtype).at[:, :c_in].set(x_band)

    w_pad = jnp.zeros((c_in_pad, c_out_pad), jnp.float32).at[:c_in, :c_out].set(w)
    b_pad = jnp.zeros((1, c_out_pad), jnp.float32).at[0, :c_out].set(b)

    counts = np.bincount(node_reduction_batch.astype(np.int64),
                         minlength=m_pad).astype(np.float32)
    if pool_type == "mean":
        sel_scale = (1.0 / np.maximum(counts, 1.0)).reshape(m_pad, 1)
    else:  # "add"
        sel_scale = np.ones((m_pad, 1), dtype=np.float32)

    # ---- dense normalized adjacency built on device (A[row,col]=1, diag=1) ----
    # Orientation matches SparseTensor(row=ei[0], col=ei[1]): out[i] = sum_j A[i,j] h[j].
    # TODO(synk): for very large sparse graphs replace dense A with block-sparse propagation.
    rows = jnp.asarray(new_edge_index[0].astype(np.int32))
    cols = jnp.asarray(new_edge_index[1].astype(np.int32))
    a = jnp.zeros((m_pad, m_pad), jnp.float32).at[rows, cols].set(1.0)
    diag = jnp.arange(m, dtype=jnp.int32)
    a = a.at[diag, diag].set(1.0)                      # gcn_norm add_self_loops
    deg = jnp.sum(a, axis=1, keepdims=True)
    dinv = jnp.where(deg > 0.0, 1.0 / jnp.sqrt(deg), 0.0)
    a_dev = a.astype(compute_dtype)                    # 0/1 values: exact in bf16

    seg_band = jnp.asarray(seg_band_np)
    sel_scale_dev = jnp.asarray(sel_scale.astype(np.float32))

    # ---- kernel 1: banded selector matmul pooling + X@W + source-degree scale ----
    pooled_pad, h_pad = pool_transform_pallas(
        seg_band, sel_scale_dev, dinv, x_band, w_pad, tm, compute_dtype, vmem_limit)

    # ---- kernel 2: A @ h propagation + dest-degree scale + bias + ReLU ----
    out_pad = gcn_propagate_pallas(a_dev, h_pad, dinv, b_pad, tm, tk, vmem_limit)

    # Padded rows of out_pad hold ReLU(bias); they are sliced away here.
    output = out_pad[:m, :c_out]
    new_x = pooled_pad[:m, :c_in]
    a_dense = a[:m, :m]
    return (output, new_edge_index, new_batch, new_batch_lengths, new_edge_batch,
            new_x, a_dense)


# ----------------------------------------------------------------------------
# Pure-JAX reference for verification
# ----------------------------------------------------------------------------
def reference(x, seg, m, a_dense, w, b, pool_type="mean", low_precision=True):
    x = jnp.asarray(x, jnp.float32)
    if low_precision:
        x = x.astype(jnp.bfloat16).astype(jnp.float32)   # mimic bf16 pooling inputs
    one_hot = (jnp.asarray(seg)[None, :] == jnp.arange(m)[:, None]).astype(jnp.float32)
    sums = one_hot @ x
    if pool_type == "mean":
        counts = one_hot.sum(axis=1, keepdims=True)
        pooled = sums / jnp.maximum(counts, 1.0)
    else:
        pooled = sums
    deg = a_dense.sum(axis=1, keepdims=True)
    dinv = jnp.where(deg > 0, 1.0 / jnp.sqrt(deg), 0.0)
    h = (pooled @ w) * dinv
    if low_precision:
        h = h.astype(jnp.bfloat16).astype(jnp.float32)    # mimic bf16 h handoff
    out = (a_dense @ h) * dinv + b[None, :]
    return pooled, jnp.maximum(out, 0.0)


if __name__ == "__main__":
    # ---- deterministic synthetic inputs: 2 graphs x 8 nodes, C_in=8, C_out=16 ----
    key = jax.random.PRNGKey(0)
    kx, kw, kb = jax.random.split(key, 3)

    N, C_IN, C_OUT, POOL_FACTOR = 16, 8, 16, 2
    POOL_TYPE = "mean"
    LOW_PRECISION = True

    x = jax.random.normal(kx, (N, C_IN), dtype=jnp.float32)

    batch = np.array([0] * 8 + [1] * 8, dtype=np.int64)
    batch_lengths = np.array([8, 8], dtype=np.int64)

    # bidirectional chains inside each graph + one extra *directed* edge per graph
    # (makes the pooled adjacency asymmetric, exercising A-orientation).
    edges, ebatch = [], []
    for g, off in enumerate((0, 8)):
        for i in range(7):
            edges.append((off + i, off + i + 1))
            edges.append((off + i + 1, off + i))
            ebatch += [g, g]
        edges.append((off + 0, off + 5))   # directed long-range edge
        ebatch.append(g)
    edge_index = np.array(edges, dtype=np.int64).T          # [2, 30]
    edge_batch = np.array(ebatch, dtype=np.int64)           # [30]

    # GCNConv parameters (deterministic init)
    w = jax.random.normal(kw, (C_IN, C_OUT), dtype=jnp.float32) / np.sqrt(C_IN)
    b = jax.random.normal(kb, (C_OUT,), dtype=jnp.float32) * 0.1

    (out, new_edge_index, new_batch, new_batch_lengths, new_edge_batch,
     new_x, a_dense) = pool_block_forward(
        x, edge_index, batch, batch_lengths, edge_batch,
        w, b, pool_factor=POOL_FACTOR, pool_type=POOL_TYPE,
        low_precision=LOW_PRECISION)
    out = jax.block_until_ready(out)
    new_x = jax.block_until_ready(new_x)

    # ---- verify against pure-JAX reference ----
    seg = get_node_reduction_batch_np(N, batch, POOL_FACTOR)
    M = int(seg[-1] + 1)
    pooled_ref, out_ref = reference(x, seg, M, jnp.asarray(a_dense, jnp.float32),
                                    w, b, POOL_TYPE, low_precision=LOW_PRECISION)
    assert out.shape == (M, C_OUT)
    assert np.allclose(np.asarray(new_x), np.asarray(pooled_ref), atol=1e-5)
    assert np.allclose(np.asarray(out), np.asarray(out_ref), atol=1e-4)

    print("KERNEL_OK")
</pallas_src>

<mosaic_0001>
module attributes {stable_mosaic.version = 11 : i64} {
  func.func @_pool_transform_kernel(%arg0: i32, %arg1: memref<1x1x16xi32, #tpu.memory_space<vmem>>, %arg2: memref<16x1xf32, #tpu.memory_space<vmem>>, %arg3: memref<16x1xf32, #tpu.memory_space<vmem>>, %arg4: memref<16x128xbf16, #tpu.memory_space<vmem>>, %arg5: memref<128x128xf32, #tpu.memory_space<vmem>>, %arg6: memref<16x128xf32, #tpu.memory_space<vmem>>, %arg7: memref<16x128xbf16, #tpu.memory_space<vmem>>) attributes {dimension_semantics = [#tpu.dimension_semantics<parallel>], iteration_bounds = array<i64: 1>, scalar_prefetch = 0 : i64, scratch_operands = 0 : i64, tpu.core_type = #tpu.core_type<tc>, window_params = [{transform_indices = @transform_0, window_bounds = array<i64: 1, 1, 16>}, {transform_indices = @transform_1, window_bounds = array<i64: 16, 1>}, {transform_indices = @transform_2, window_bounds = array<i64: 16, 1>}, {transform_indices = @transform_3, window_bounds = array<i64: 16, 128>}, {pipeline_mode = #tpu.pipeline_mode<synchronous>, transform_indices = @transform_4, window_bounds = array<i64: 128, 128>}, {transform_indices = @transform_5, window_bounds = array<i64: 16, 128>}, {transform_indices = @transform_6, window_bounds = array<i64: 16, 128>}]} {
    %c16_i32 = arith.constant 16 : i32
    %0 = arith.muli %arg0, %c16_i32 : i32
    %c0 = arith.constant 0 : index
    %c0_0 = arith.constant 0 : index
    %c0_1 = arith.constant 0 : index
    %1 = vector.load %arg1[%c0, %c0_0, %c0_1] : memref<1x1x16xi32, #tpu.memory_space<vmem>>, vector<1x1x16xi32>
    %2 = vector.shape_cast %1 : vector<1x1x16xi32> to vector<1x16xi32>
    %3 = tpu.iota {dimensions = array<i32: 0>} : vector<16x16xi32>
    %4 = vector.broadcast %0 : i32 to vector<16x16xi32>
    %5 = arith.addi %3, %4 : vector<16x16xi32>
    %6 = vector.broadcast %2 : vector<1x16xi32> to vector<16x16xi32>
    %7 = arith.cmpi eq, %5, %6 : vector<16x16xi32>
    %8 = arith.extui %7 : vector<16x16xi1> to vector<16x16xi32>
    %9 = arith.sitofp %8 : vector<16x16xi32> to vector<16x16xf32>
    %10 = arith.truncf %9 : vector<16x16xf32> to vector<16x16xbf16>
    %c0_2 = arith.constant 0 : index
    %c0_3 = arith.constant 0 : index
    %11 = vector.load %arg4[%c0_2, %c0_3] : memref<16x128xbf16, #tpu.memory_space<vmem>>, vector<16x128xbf16>
    %cst = arith.constant dense<0.000000e+00> : vector<16x128xf32>
    %12 = tpu.matmul %10, %11, %cst {dimension_numbers = #tpu.dot_dimension_numbers<[1], [0], [0], [1], [0, 0, 1, 1], [], []>} : vector<16x16xbf16>, vector<16x128xbf16>, vector<16x128xf32> -> vector<16x128xf32>
    %c0_4 = arith.constant 0 : index
    %c0_5 = arith.constant 0 : index
    %13 = vector.load %arg2[%c0_4, %c0_5] : memref<16x1xf32, #tpu.memory_space<vmem>>, vector<16x1xf32>
    %14 = vector.broadcast %13 : vector<16x1xf32> to vector<16x128xf32>
    %15 = arith.mulf %12, %14 : vector<16x128xf32>
    %c0_6 = arith.constant 0 : index
    %c0_7 = arith.constant 0 : index
    %16 = vector.load %arg6[%c0_6, %c0_7] : memref<16x128xf32, #tpu.memory_space<vmem>>, vector<16x128xf32>
    tpu.vector_store %arg6[%c0_6, %c0_7], %15 {strides = array<i32>} : memref<16x128xf32, #tpu.memory_space<vmem>>, vector<16x128xf32>,
    %c0_8 = arith.constant 0 : index
    %c0_9 = arith.constant 0 : index
    %17 = vector.load %arg5[%c0_8, %c0_9] : memref<128x128xf32, #tpu.memory_space<vmem>>, vector<128x128xf32>
    %cst_10 = arith.constant dense<0.000000e+00> : vector<16x128xf32>
    %18 = tpu.matmul %15, %17, %cst_10 {dimension_numbers = #tpu.dot_dimension_numbers<[1], [0], [0], [1], [0, 0, 1, 1], [], []>} : vector<16x128xf32>, vector<128x128xf32>, vector<16x128xf32> -> vector<16x128xf32>
    %c0_11 = arith.constant 0 : index
    %c0_12 = arith.constant 0 : index
    %19 = vector.load %arg3[%c0_11, %c0_12] : memref<16x1xf32, #tpu.memory_space<vmem>>, vector<16x1xf32>
    %20 = vector.broadcast %19 : vector<16x1xf32> to vector<16x128xf32>
    %21 = arith.mulf %18, %20 : vector<16x128xf32>
    %22 = arith.truncf %21 : vector<16x128xf32> to vector<16x128xbf16>
    %c0_13 = arith.constant 0 : index
    %c0_14 = arith.constant 0 : index
    %23 = vector.load %arg7[%c0_13, %c0_14] : memref<16x128xbf16, #tpu.memory_space<vmem>>, vector<16x128xbf16>
    tpu.vector_store %arg7[%c0_13, %c0_14], %22 {strides = array<i32>} : memref<16x128xbf16, #tpu.memory_space<vmem>>, vector<16x128xbf16>,
    return
  }
  func.func @transform_0(%arg0: i32) -> (i32, i32, i32) {
    %c0_i32 = arith.constant 0 : i32
    %c0_i32_0 = arith.constant 0 : i32
    %c0_i32_1 = arith.constant 0 : i32
    return %arg0, %c0_i32, %c0_i32_0 : i32, i32, i32
  }
  func.func @transform_1(%arg0: i32) -> (i32, i32) {
    %c0_i32 = arith.constant 0 : i32
    %c0_i32_0 = arith.constant 0 : i32
    return %arg0, %c0_i32 : i32, i32
  }
  func.func @transform_2(%arg0: i32) -> (i32, i32) {
    %c0_i32 = arith.constant 0 : i32
    %c0_i32_0 = arith.constant 0 : i32
    return %arg0, %c0_i32 : i32, i32
  }
  func.func @transform_3(%arg0: i32) -> (i32, i32) {
    %c0_i32 = arith.constant 0 : i32
    %c0_i32_0 = arith.constant 0 : i32
    return %arg0, %c0_i32 : i32, i32
  }
  func.func @transform_4(%arg0: i32) -> (i32, i32) {
    %c0_i32 = arith.constant 0 : i32
    %c0_i32_0 = arith.constant 0 : i32
    %c0_i32_1 = arith.constant 0 : i32
    return %c0_i32, %c0_i32_0 : i32, i32
  }
  func.func @transform_5(%arg0: i32) -> (i32, i32) {
    %c0_i32 = arith.constant 0 : i32
    %c0_i32_0 = arith.constant 0 : i32
    return %arg0, %c0_i32 : i32, i32
  }
  func.func @transform_6(%arg0: i32) -> (i32, i32) {
    %c0_i32 = arith.constant 0 : i32
    %c0_i32_0 = arith.constant 0 : i32
    return %arg0, %c0_i32 : i32, i32
  }
}

</mosaic_0001>

<bundles_post_ra>
// kernel: tpu_custom_call.1
= control target key start
LH: loop header
LB: loop body
LE: loop exit
PB: predicated region body
PF: predicated region fallthrough
CT: control target
= control target key end

     0   :  { %12 = vsyncpa [#allocation3], 0  ;;  %s389_s0 = inlined_call_operand.vmem [shape: s32[1,1,16], index: 0, kind: input, shape index: {}]   ;;  %s390_s1 = inlined_call_operand.vmem [shape: f32[16,1], index: 1, kind: input, shape index: {}]   ;;  %s391_s2 = inlined_call_operand.vmem [shape: f32[16,1], index: 2, kind: input, shape index: {}]   ;;  %s392_s3 = inlined_call_operand.vmem [shape: bf16[16,128], index: 3, kind: input, shape index: {}]   ;;  %s393_s4 = inlined_call_operand.hbm [shape: f32[128,128], index: 4, kind: input, shape index: {}]   ;;  %s394_s5 = inlined_call_operand.hbm [shape: f32[16,128], index: 5, kind: output, shape index: {0}]   ;;  %s395_s6 = inlined_call_operand.hbm [shape: bf16[16,128], index: 6, kind: output, shape index: {1}]  }
   0x1   :  { %13 = vsyncpa [#allocation4], 0 }
   0x2   :  { %14 = vsyncpa [#allocation7], 0  ;;  %s27_s23 = sshll.u32 %s393_s4, 4  ;;  %s312_s24 = smov [#allocation2]   ;;  %s28_s23 = int_to_ptr.hbm [resolvable:$true] %s27_s23 }
   0x3   :  { %s29_s25 = sshll.u32 %s312_s24, 4  ;;  %s313_s26 = smov 128   ;;  %s30_s25 = int_to_ptr.vmem [resolvable:$true] %s29_s25 }
   0x4   :  { %s314_s27 = smov 8  }
   0x5   :  { %35 = dma.hbm_to_vmem [thread:$0]  %s28_s23, 2048, %s30_s25, [#allocation3], %s313_s26, %s313_s26, %s314_s27  }
   0x6   :  { %306 = dma.done.wait [#allocation3], 2048  }
   0x7   :  { %307 = vsyncadd [#allocation3], 4294965248  ;;  %v43_v0 = vlaneseq  ;;  %v315_v1 = vmov 0   ;;  %v200_v4 = vld [vmem:[%s392_s3] sm:$0xff]  ;;  %v84_v6 = vld [vmem:[%s390_s1 + $0x8] sm:$0xff]  ;;  %v316_v9 = vmov 0.0  }
   0x8   :  { %231 = vset.pattern.permute.xlu0 %v315_v1  ;;  %232 = vset.pattern.permute.xlu1 %v315_v1  ;;  %v233_v5 = vld [vmem:[%s389_s0] ss:$0 sm:$0xff]  ;;  %v114_v7 = vld [vmem:[#allocation2 + $0x78] sm:$0xff]  ;;  %v113_v8 = vld [vmem:[#allocation2 + $0x70] sm:$0xff]  ;;  %vm65_vm2 = vcmask 130048   ;;  %s317_s12 = smov [#allocation5]  }
   0x9   :  { %v44_v2 = vshrl.u32 %v43_v0, 7  ;;  %76 = vmatpush.bf16.msra.mxu0 %v200_v4  ;;  %92 = vperm.xlu0 %231, %v84_v6   ;;  %v112_v13 = vld [vmem:[#allocation2 + $0x68] sm:$0xff]  ;;  %v111_v14 = vld [vmem:[#allocation2 + $0x60] sm:$0xff]  ;;  %v110_v16 = vld [vmem:[#allocation2 + $0x58] sm:$0xff]  ;;  %s160_s13 = sshll.u32 %s317_s12, 4  ;;  %s162_s16 = sshll.u32 %s394_s5, 4  ;;  %s161_s13 = int_to_ptr.vmem [resolvable:$true] %s160_s13  ;;  %s163_s16 = int_to_ptr.hbm [resolvable:$true] %s162_s16 }
   0xa   :  { %115 = vmatpush.msra.mxu1 %v114_v7  ;;  %206 = vmatpush.msra.mxu2 %v114_v7  ;;  %v83_v15 = vld [vmem:[%s390_s1] sm:$0xff]  ;;  %v109_v17 = vld [vmem:[#allocation2 + $0x50] sm:$0xff]  ;;  %v108_v18 = vld [vmem:[#allocation2 + $0x48] sm:$0xff]  ;;  %s175_s20 = sshll.u32 %s395_s6, 4  ;;  %s319_s5 = smov 64   ;;  %s176_s20 = int_to_ptr.hbm [resolvable:$true] %s175_s20 }
   0xb   :  { %v45_v3 = vadd.s32 8, %v44_v2  ;;  %vm50_vm0 = vcmp.eq.s32.totalorder %v44_v2, %v233_v5  ;;  %v107_v19 = vld [vmem:[#allocation2 + $0x40] sm:$0xff]  ;;  %v106_v20 = vld [vmem:[#allocation2 + $0x38] sm:$0xff]  ;;  %v105_v21 = vld [vmem:[#allocation2 + $0x30] sm:$0xff]  ;;  %s320_s21 = smov 4  }
   0xc   :  { %v193_v10 = vsel %vm50_vm0, 1.0, %v316_v9  ;;  %116 = vmatpush.msra.mxu1 %v113_v8  ;;  %207 = vmatpush.msra.mxu2 %v113_v8  ;;  %v104_v22 = vld [vmem:[#allocation2 + $0x28] sm:$0xff]  ;;  %v103_v23 = vld [vmem:[#allocation2 + $0x20] sm:$0xff]  ;;  %v102_v24 = vld [vmem:[#allocation2 + $0x18] sm:$0xff] }
   0xd   :  { %vm51_vm1 = vcmp.eq.s32.totalorder %v45_v3, %v233_v5  ;;  %v101_v25 = vld [vmem:[#allocation2 + $0x10] sm:$0xff]  ;;  %v100_v26 = vld [vmem:[#allocation2 + $0x8] sm:$0xff]  ;;  %v99_v27 = vld [vmem:[#allocation2] sm:$0xff] }
   0xe   :  { %v194_v11 = vsel %vm51_vm1, 1.0, %v316_v9  ;;  %117 = vmatpush.msra.mxu1 %v112_v13  ;;  %208 = vmatpush.msra.mxu2 %v112_v13  ;;  %v138_v28 = vld [vmem:[%s391_s2] sm:$0xff]  ;;  %v139_v29 = vld [vmem:[%s391_s2 + $0x8] sm:$0xff]  ;;  %s318_s2 = smov [#allocation6]  }
   0xf   :  { %v56_v12 = vpack.c.bf16 %v194_v11, %v193_v10  ;;  %142 = vperm.xlu1 %232, %v138_v28   ;;  %s173_s17 = sshll.u32 %s318_s2, 4  ;;  %s174_s17 = int_to_ptr.vmem [resolvable:$true] %s173_s17 }
  0x10   :  { %118 = vmatpush.msra.mxu1 %v111_v14  ;;  %209 = vmatpush.msra.mxu2 %v111_v14 }
  0x11   :  { %199 = vmatmul.msk.bf16.vlgmr.msra.gmra.mxu0 %vm65_vm2, %v56_v12  ;;  %87 = vperm.xlu0 %231, %v83_v15  }
  0x12   :  { %119 = vmatpush.msra.mxu1 %v110_v16  ;;  %210 = vmatpush.msra.mxu2 %v110_v16 }
  0x14   :  { %120 = vmatpush.msra.mxu1 %v109_v17  ;;  %211 = vmatpush.msra.mxu2 %v109_v17 }
  0x16   :  { %121 = vmatpush.msra.mxu1 %v108_v18  ;;  %212 = vmatpush.msra.mxu2 %v108_v18 }
  0x17   :  { %147 = vperm.xlu1 %232, %v139_v29  }
  0x18   :  { %122 = vmatpush.msra.mxu1 %v107_v19  ;;  %213 = vmatpush.msra.mxu2 %v107_v19 }
  0x1a   :  { %123 = vmatpush.msra.mxu1 %v106_v20  ;;  %214 = vmatpush.msra.mxu2 %v106_v20 }
  0x1c   :  { %124 = vmatpush.msra.mxu1 %v105_v21  ;;  %215 = vmatpush.msra.mxu2 %v105_v21 }
  0x1e   :  { %125 = vmatpush.msra.mxu1 %v104_v22  ;;  %216 = vmatpush.msra.mxu2 %v104_v22 }
  0x20   :  { %126 = vmatpush.msra.mxu1 %v103_v23  ;;  %217 = vmatpush.msra.mxu2 %v103_v23 }
  0x22   :  { %127 = vmatpush.msra.mxu1 %v102_v24  ;;  %218 = vmatpush.msra.mxu2 %v102_v24 }
  0x24   :  { %128 = vmatpush.msra.mxu1 %v101_v25  ;;  %219 = vmatpush.msra.mxu2 %v101_v25 }
  0x26   :  { %129 = vmatpush.msra.mxu1 %v100_v26  ;;  %220 = vmatpush.msra.mxu2 %v100_v26 }
  0x28   :  { %130 = vmatpush.msra.mxu1 %v99_v27  ;;  %221 = vmatpush.msra.mxu2 %v99_v27 }
  0x7b   :  { %v93_v30 = vpop.permute.xlu0 %92 }
  0x81   :  { %v143_v36 = vpop.permute.xlu1 %142 }
  0x83   :  { %v88_v31 = vpop.permute.xlu0 %87 }
  0x89   :  { %v148_v38 = vpop.permute.xlu1 %147 }
  0x8e   :  { %v78_v32 = vpop.f32.mrf.mxu0 }
  0x8f   :  { %v95_v33 = vmul.f32 %v88_v31, %v78_v32 }
  0x91   :  { %97 = vst [vmem:[#allocation5] sm:$0xff] %v95_v33  ;;  %131 = vmatmul.f32.vlgmr.msra.gmra.mxu1 %v95_v33 }
  0x96   :  { %v80_v34 = vpop.f32.mrf.mxu0 }
  0x97   :  { %v96_v35 = vmul.f32 %v93_v30, %v80_v34 }
  0x99   :  { %98 = vst [vmem:[#allocation5 + $0x8] sm:$0xff] %v96_v35  ;;  %134 = vmatmul.f32.vlgmr.msra.gmra.mxu2 %v96_v35 }
  0x9a   :  { %168 = dma.vmem_to_hbm [thread:$0]  %s161_s13, 256, %s163_s16, [#allocation4], %s313_s26, %s313_s26, %s314_s27  }
 0x10e   :  { %v132_v37 = vpop.f32.mrf.mxu1 }
 0x10f   :  { %v150_v40 = vmul.f32 %v143_v36, %v132_v37 }
 0x11c   :  { %v135_v39 = vpop.f32.mrf.mxu2 }
 0x11d   :  { %v151_v41 = vmul.f32 %v148_v38, %v135_v39 }
 0x11f   :  { %v204_v42 = vpack.c.bf16 %v151_v41, %v150_v40 }
 0x121   :  { %205 = vst [vmem:[#allocation6] sm:$0xff] %v204_v42  }
 0x122   :  { %181 = dma.vmem_to_hbm [thread:$0]  %s174_s17, 128, %s176_s20, [#allocation7], %s319_s5, %s319_s5, %s320_s21  }
 0x123   :  { %308 = dma.done.wait [#allocation4], 256  }
 0x124   :  { %309 = vsyncadd [#allocation4], 4294967040 }
 0x125   :  { %310 = dma.done.wait [#allocation7], 128  }
 0x126   :  { %311 = vsyncadd [#allocation7], 4294967168 }
 0x127   :  { %190 = vsyncpa [#allocation3], 1 }
 0x128   :  { %191 = vsyncpa [#allocation4], 1 }
 0x129   :  { %192 = vsyncpa [#allocation7], 1 }

</bundles_post_ra>
